<compile_context>
chip_gen: v5e
topology: v5e:2x2
jax: 0.10.0
libtpu: 0.0.40
codegen_flags: <defaults>
</compile_context>

<pallas_src>
import jax
import jax.numpy as jnp
from jax.experimental import pallas as pl
from jax.experimental.pallas import tpu as pltpu


def _round_up(x, m):
    return ((x + m - 1) // m) * m


def _cdiv(a, b):
    return (a + b - 1) // b


def jem_mlp_kernel(x_ref, w1_ref, b1_ref, w2_ref, b2_ref, o_ref):
    # bf16 cast on the VPU (free on the HBM-bound path; no-op if x is already
    # bf16), then layer 1 on the MXU with f32 accumulation, bias + ReLU on VPU.
    x = x_ref[...].astype(jnp.bfloat16)
    h = jnp.dot(x, w1_ref[...], preferred_element_type=jnp.float32)
    h = jnp.maximum(h + b1_ref[...], 0.0)
    # Layer 2 on the MXU, bias add, lane-dense f32 store.
    out = jnp.dot(h.astype(jnp.bfloat16), w2_ref[...],
                  preferred_element_type=jnp.float32)
    o_ref[...] = out + b2_ref[...]


def prepare_jem_params(w1, b1, w2, b2):
    """Pad/cast the MLP parameters ONCE (call outside any MCMC/sampling loop).

    Hidden and output feature axes are padded to 128 lanes; weights go to bf16
    (MXU-native, halves their HBM/VMEM footprint), biases stay f32.  The D axis
    is left unpadded (full-extent blocks are legal, so no zero columns).
    """
    D, H = w1.shape
    NOUT = w2.shape[1]
    H_pad = _round_up(H, 128)
    NOUT_pad = _round_up(NOUT, 128)
    w1p = jnp.zeros((D, H_pad), jnp.bfloat16).at[:, :H].set(
        w1.astype(jnp.bfloat16))
    b1p = jnp.zeros((1, H_pad), jnp.float32).at[:, :H].set(
        b1.reshape(1, H).astype(jnp.float32))
    w2p = jnp.zeros((H_pad, NOUT_pad), jnp.bfloat16).at[:H, :NOUT].set(
        w2.astype(jnp.bfloat16))
    b2p = jnp.zeros((1, NOUT_pad), jnp.float32).at[:, :NOUT].set(
        b2.reshape(1, NOUT).astype(jnp.float32))
    return w1p, b1p, w2p, b2p, NOUT


def product_of_jems_forward(x_nchw, w1p, b1p, w2p, b2p, *, nout, n_att,
                            tm_max=512):
    """Returns split logits of shape (B, n_att, n_choices)."""
    B = x_nchw.shape[0]
    x_flat = x_nchw.reshape(B, -1)        # flatten NCHW -> (B, D); no data copy
    D = x_flat.shape[1]
    H_pad = w1p.shape[1]
    NOUT_pad = w2p.shape[1]
    assert w1p.shape[0] == D, (w1p.shape, D)

    # ---- batch tiling: TM multiple of 8 sublanes, >= 2 tiles when the batch
    # allows (so both v7x TensorCores get work), minimal batch padding.
    B8 = _round_up(max(B, 1), 8)
    n_tiles = 1 if B8 <= 8 else max(2, _cdiv(B8, tm_max))
    TM = _round_up(_cdiv(B8, n_tiles), 8)
    B_pad = n_tiles * TM

    # ---- feed x straight in when no batch padding is needed (bf16 cast done
    # in-kernel); otherwise fold pad + bf16 cast into a single pass.
    if B_pad == B:
        xin = x_flat
    else:
        xin = jnp.zeros((B_pad, D), jnp.bfloat16).at[:B].set(
            x_flat.astype(jnp.bfloat16))
    x_bytes = jnp.dtype(xin.dtype).itemsize

    grid = (n_tiles,)

    # Advisory cost estimate for XLA's scheduler (e.g. around an MCMC loop).
    flops = 2 * B_pad * D * H_pad + 2 * B_pad * H_pad * NOUT_pad
    bytes_accessed = (B_pad * D * x_bytes + w1p.size * 2 + w2p.size * 2
                      + b1p.size * 4 + b2p.size * 4 + B_pad * NOUT_pad * 4)
    cost = pl.CostEstimate(flops=flops, transcendentals=0,
                           bytes_accessed=bytes_accessed)

    # VMEM budget: double-buffered x / out tiles, single-buffered resident
    # weights and biases, in-kernel temps, headroom — capped at ~85% of this
    # generation's VMEM capacity (64 MiB on v7x, 128 MiB on v5e/v6e).
    vmem_need = (2 * TM * D * x_bytes                       # x tile, x2 buffers
                 + 2 * TM * NOUT_pad * 4                    # out tile, x2
                 + D * H_pad * 2 + H_pad * NOUT_pad * 2     # resident weights x1
                 + H_pad * 4 + NOUT_pad * 4                 # resident biases x1
                 + TM * (2 * D + 6 * H_pad + 4 * NOUT_pad)  # in-kernel temps
                 + (4 << 20))                               # compiler headroom
    try:
        vmem_cap = int(getattr(pltpu.get_tpu_info(), "vmem_capacity_bytes",
                               64 << 20))
    except Exception:
        vmem_cap = 64 << 20
    vmem_limit = int(min(max(vmem_need, 32 << 20), int(0.85 * vmem_cap)))

    resident = dict(pipeline_mode=pl.Buffered(1))   # DMA'd once, stays in VMEM
    logits = pl.pallas_call(
        jem_mlp_kernel,
        out_shape=jax.ShapeDtypeStruct((B_pad, NOUT_pad), jnp.float32),
        grid=grid,
        in_specs=[
            # Streamed per batch tile (double-buffered by default).
            # TODO(synk): on v7x, try pipeline_mode=pl.Buffered(3) here if a
            # profile still shows exposed DMA after enlarging TM.
            pl.BlockSpec((TM, D), lambda i: (i, 0)),
            pl.BlockSpec((D, H_pad), lambda i: (0, 0), **resident),
            pl.BlockSpec((1, H_pad), lambda i: (0, 0), **resident),
            pl.BlockSpec((H_pad, NOUT_pad), lambda i: (0, 0), **resident),
            pl.BlockSpec((1, NOUT_pad), lambda i: (0, 0), **resident),
        ],
        out_specs=pl.BlockSpec((TM, NOUT_pad), lambda i: (i, 0)),
        compiler_params=pltpu.CompilerParams(
            dimension_semantics=("parallel",),
            vmem_limit_bytes=vmem_limit),
        cost_estimate=cost,
    )(xin, w1p, b1p, w2p, b2p)

    # Slice away padding.  Matches torch `.squeeze()` + `.view(B, n_att, -1)`;
    # we reshape directly (robust even when B == 1, unlike squeeze()).
    return logits[:B, :nout].reshape(B, n_att, -1)


def reference_forward(x_nchw, w1, b1, w2, b2, n_att):
    """Plain-JAX f32 reference for correctness checking."""
    B = x_nchw.shape[0]
    x_flat = x_nchw.reshape(B, -1)
    h = jnp.maximum(x_flat @ w1 + b1, 0.0)
    logits = h @ w2 + b2
    return logits.reshape(B, n_att, -1)


if __name__ == "__main__":
    # Shapes consistent with the module's forward:
    #   nums_attributes = [4, 4, 4, 4] (uniform) -> n_att=4, nout=16
    B, C, Hs, Ws = 2, 4, 16, 16
    n_att, n_choices = 4, 4
    NOUT = n_att * n_choices
    D = C * Hs * Ws
    HID = 32

    key = jax.random.PRNGKey(0)
    kx, kw1, kb1, kw2, kb2 = jax.random.split(key, 5)

    x = jax.random.normal(kx, (B, C, Hs, Ws), dtype=jnp.float32)
    w1 = jax.random.normal(kw1, (D, HID), dtype=jnp.float32) * 0.02
    b1 = jax.random.normal(kb1, (1, HID), dtype=jnp.float32) * 0.01
    w2 = jax.random.normal(kw2, (HID, NOUT), dtype=jnp.float32) * 0.02
    b2 = jax.random.normal(kb2, (1, NOUT), dtype=jnp.float32) * 0.01

    # Pad/cast the parameters once, outside the forward (and outside any
    # MCMC/sampler loop that would call forward repeatedly).
    w1p, b1p, w2p, b2p, nout = prepare_jem_params(w1, b1, w2, b2)

    fwd = jax.jit(product_of_jems_forward,
                  static_argnames=("nout", "n_att", "tm_max"))
    out = fwd(x, w1p, b1p, w2p, b2p, nout=nout, n_att=n_att, tm_max=512)
    out = jax.block_until_ready(out)

    ref = reference_forward(x, w1, b1, w2, b2, n_att)
    assert out.shape == (B, n_att, n_choices), out.shape
    # bf16 weights/activations with f32 accumulation -> bf16-level tolerance.
    assert jnp.allclose(out, ref, atol=1e-2, rtol=1e-2), "mismatch vs reference"

    # TODO(synk): MCMC samplers (short_run_mcmc / partial_gibbs_short_run_mcmc),
    # init_dist noise sampling, and logp/accuracy/metric helpers are host-side
    # orchestration around forward(), not part of the forward-pass kernel.
    print("KERNEL_OK")
</pallas_src>

<mosaic_0001>
module attributes {stable_mosaic.version = 11 : i64} {
  func.func @jem_mlp_kernel(%arg0: i32, %arg1: memref<8x1024xbf16, #tpu.memory_space<vmem>>, %arg2: memref<1024x128xbf16, #tpu.memory_space<vmem>>, %arg3: memref<1x128xf32, #tpu.memory_space<vmem>>, %arg4: memref<128x128xbf16, #tpu.memory_space<vmem>>, %arg5: memref<1x128xf32, #tpu.memory_space<vmem>>, %arg6: memref<8x128xf32, #tpu.memory_space<vmem>>) attributes {dimension_semantics = [#tpu.dimension_semantics<parallel>], iteration_bounds = array<i64: 1>, scalar_prefetch = 0 : i64, scratch_operands = 0 : i64, tpu.core_type = #tpu.core_type<tc>, window_params = [{transform_indices = @transform_0, window_bounds = array<i64: 8, 1024>}, {pipeline_mode = #tpu.pipeline_mode<synchronous>, transform_indices = @transform_1, window_bounds = array<i64: 1024, 128>}, {pipeline_mode = #tpu.pipeline_mode<synchronous>, transform_indices = @transform_2, window_bounds = array<i64: 1, 128>}, {pipeline_mode = #tpu.pipeline_mode<synchronous>, transform_indices = @transform_3, window_bounds = array<i64: 128, 128>}, {pipeline_mode = #tpu.pipeline_mode<synchronous>, transform_indices = @transform_4, window_bounds = array<i64: 1, 128>}, {transform_indices = @transform_5, window_bounds = array<i64: 8, 128>}]} {
    %c0 = arith.constant 0 : index
    %c0_0 = arith.constant 0 : index
    %0 = vector.load %arg1[%c0, %c0_0] : memref<8x1024xbf16, #tpu.memory_space<vmem>>, vector<8x1024xbf16>
    %c0_1 = arith.constant 0 : index
    %c0_2 = arith.constant 0 : index
    %1 = vector.load %arg2[%c0_1, %c0_2] : memref<1024x128xbf16, #tpu.memory_space<vmem>>, vector<1024x128xbf16>
    %cst = arith.constant dense<0.000000e+00> : vector<8x128xf32>
    %2 = tpu.matmul %0, %1, %cst {dimension_numbers = #tpu.dot_dimension_numbers<[1], [0], [0], [1], [0, 0, 1, 1], [], []>} : vector<8x1024xbf16>, vector<1024x128xbf16>, vector<8x128xf32> -> vector<8x128xf32>
    %c0_3 = arith.constant 0 : index
    %c0_4 = arith.constant 0 : index
    %3 = vector.load %arg3[%c0_3, %c0_4] : memref<1x128xf32, #tpu.memory_space<vmem>>, vector<1x128xf32>
    %4 = vector.broadcast %3 : vector<1x128xf32> to vector<8x128xf32>
    %5 = arith.addf %2, %4 : vector<8x128xf32>
    %cst_5 = arith.constant 0.000000e+00 : f32
    %6 = vector.broadcast %cst_5 : f32 to vector<8x128xf32>
    %7 = arith.maximumf %5, %6 : vector<8x128xf32>
    %8 = arith.truncf %7 : vector<8x128xf32> to vector<8x128xbf16>
    %c0_6 = arith.constant 0 : index
    %c0_7 = arith.constant 0 : index
    %9 = vector.load %arg4[%c0_6, %c0_7] : memref<128x128xbf16, #tpu.memory_space<vmem>>, vector<128x128xbf16>
    %cst_8 = arith.constant dense<0.000000e+00> : vector<8x128xf32>
    %10 = tpu.matmul %8, %9, %cst_8 {dimension_numbers = #tpu.dot_dimension_numbers<[1], [0], [0], [1], [0, 0, 1, 1], [], []>} : vector<8x128xbf16>, vector<128x128xbf16>, vector<8x128xf32> -> vector<8x128xf32>
    %c0_9 = arith.constant 0 : index
    %c0_10 = arith.constant 0 : index
    %11 = vector.load %arg5[%c0_9, %c0_10] : memref<1x128xf32, #tpu.memory_space<vmem>>, vector<1x128xf32>
    %12 = vector.broadcast %11 : vector<1x128xf32> to vector<8x128xf32>
    %13 = arith.addf %10, %12 : vector<8x128xf32>
    %c0_11 = arith.constant 0 : index
    %c0_12 = arith.constant 0 : index
    %14 = vector.load %arg6[%c0_11, %c0_12] : memref<8x128xf32, #tpu.memory_space<vmem>>, vector<8x128xf32>
    tpu.vector_store %arg6[%c0_11, %c0_12], %13 {strides = array<i32>} : memref<8x128xf32, #tpu.memory_space<vmem>>, vector<8x128xf32>,
    return
  }
  func.func @transform_0(%arg0: i32) -> (i32, i32) {
    %c0_i32 = arith.constant 0 : i32
    %c0_i32_0 = arith.constant 0 : i32
    return %arg0, %c0_i32 : i32, i32
  }
  func.func @transform_1(%arg0: i32) -> (i32, i32) {
    %c0_i32 = arith.constant 0 : i32
    %c0_i32_0 = arith.constant 0 : i32
    %c0_i32_1 = arith.constant 0 : i32
    return %c0_i32, %c0_i32_0 : i32, i32
  }
  func.func @transform_2(%arg0: i32) -> (i32, i32) {
    %c0_i32 = arith.constant 0 : i32
    %c0_i32_0 = arith.constant 0 : i32
    %c0_i32_1 = arith.constant 0 : i32
    return %c0_i32, %c0_i32_0 : i32, i32
  }
  func.func @transform_3(%arg0: i32) -> (i32, i32) {
    %c0_i32 = arith.constant 0 : i32
    %c0_i32_0 = arith.constant 0 : i32
    %c0_i32_1 = arith.constant 0 : i32
    return %c0_i32, %c0_i32_0 : i32, i32
  }
  func.func @transform_4(%arg0: i32) -> (i32, i32) {
    %c0_i32 = arith.constant 0 : i32
    %c0_i32_0 = arith.constant 0 : i32
    %c0_i32_1 = arith.constant 0 : i32
    return %c0_i32, %c0_i32_0 : i32, i32
  }
  func.func @transform_5(%arg0: i32) -> (i32, i32) {
    %c0_i32 = arith.constant 0 : i32
    %c0_i32_0 = arith.constant 0 : i32
    return %arg0, %c0_i32 : i32, i32
  }
}

</mosaic_0001>

<bundles_post_ra>
// kernel: product_of_jems_forward.1
= control target key start
LH: loop header
LB: loop body
LE: loop exit
PB: predicated region body
PF: predicated region fallthrough
CT: control target
= control target key end

     0   :  { %10 = vsyncpa [#allocation3], 0  ;;  %s1168_s21 = smov [#allocation2]   ;;  %s1169_s23 = smov 64   ;;  %s1249_s0 = inlined_call_operand.vmem [shape: bf16[8,1024], index: 0, kind: input, shape index: {}]   ;;  %s1250_s1 = inlined_call_operand.hbm [shape: bf16[1024,128], index: 1, kind: input, shape index: {}]   ;;  %s1251_s2 = inlined_call_operand.vmem [shape: f32[1,128], index: 2, kind: input, shape index: {}]   ;;  %s1252_s3 = inlined_call_operand.vmem [shape: bf16[128,128], index: 3, kind: input, shape index: {}]   ;;  %s1253_s4 = inlined_call_operand.vmem [shape: f32[1,128], index: 4, kind: input, shape index: {}]   ;;  %s1254_s5 = inlined_call_operand.vmem [shape: f32[8,128], index: 5, kind: output, shape index: {}]  }
   0x1   :  { %s17_s20 = sshll.u32 %s1250_s1, 4  ;;  %s19_s22 = sshll.u32 %s1168_s21, 4  ;;  %s18_s20 = int_to_ptr.hbm [resolvable:$true] %s17_s20  ;;  %s20_s22 = int_to_ptr.vmem [resolvable:$true] %s19_s22 }
   0x2   :  { %s1170_s24 = smov 4  }
   0x3   :  { %25 = dma.hbm_to_vmem [thread:$0]  %s18_s20, 8192, %s20_s22, [#allocation3], %s1169_s23, %s1169_s23, %s1170_s24  }
   0x4   :  { %1166 = dma.done.wait [#allocation3], 8192  }
   0x5   :  { %1167 = vsyncadd [#allocation3], 4294959104  ;;  %v1072_v0 = vld [vmem:[#allocation2 + $0x38] sm:$0xff]  ;;  %v1071_v4 = vld [vmem:[#allocation2 + $0x30] sm:$0xff] }
   0x6   :  { %v1080_v1 = vld [vmem:[#allocation2 + $0x78] sm:$0xff]  ;;  %584 = vmatpush.bf16.msra.mxu0 %v1072_v0  ;;  %v1079_v5 = vld [vmem:[#allocation2 + $0x70] sm:$0xff]  ;;  %v1070_v8 = vld [vmem:[#allocation2 + $0x28] sm:$0xff] }
   0x7   :  { %v1088_v2 = vld [vmem:[#allocation2 + $0xb8] sm:$0xff]  ;;  %597 = vmatpush.bf16.msra.mxu1 %v1080_v1  ;;  %v1087_v6 = vld [vmem:[#allocation2 + $0xb0] sm:$0xff]  ;;  %v1078_v9 = vld [vmem:[#allocation2 + $0x68] sm:$0xff] }
   0x8   :  { %v1096_v3 = vld [vmem:[#allocation2 + $0xf8] sm:$0xff]  ;;  %610 = vmatpush.bf16.msra.mxu2 %v1088_v2  ;;  %v1095_v7 = vld [vmem:[#allocation2 + $0xf0] sm:$0xff]  ;;  %v1086_v10 = vld [vmem:[#allocation2 + $0xa8] sm:$0xff] }
   0x9   :  { %623 = vmatpush.bf16.msra.mxu3 %v1096_v3  ;;  %v1094_v11 = vld [vmem:[#allocation2 + $0xe8] sm:$0xff]  ;;  %v1069_v12 = vld [vmem:[#allocation2 + $0x20] sm:$0xff]  ;;  %v1068_v16 = vld [vmem:[#allocation2 + $0x18] sm:$0xff] }
   0xa   :  { %585 = vmatpush.bf16.msra.mxu0 %v1071_v4  ;;  %v1077_v13 = vld [vmem:[#allocation2 + $0x60] sm:$0xff]  ;;  %v1076_v17 = vld [vmem:[#allocation2 + $0x58] sm:$0xff]  ;;  %v1067_v20 = vld [vmem:[#allocation2 + $0x10] sm:$0xff] }
   0xb   :  { %598 = vmatpush.bf16.msra.mxu1 %v1079_v5  ;;  %v1085_v14 = vld [vmem:[#allocation2 + $0xa0] sm:$0xff]  ;;  %v1084_v18 = vld [vmem:[#allocation2 + $0x98] sm:$0xff]  ;;  %v1075_v21 = vld [vmem:[#allocation2 + $0x50] sm:$0xff] }
   0xc   :  { %611 = vmatpush.bf16.msra.mxu2 %v1087_v6  ;;  %v1093_v15 = vld [vmem:[#allocation2 + $0xe0] sm:$0xff]  ;;  %v1092_v19 = vld [vmem:[#allocation2 + $0xd8] sm:$0xff]  ;;  %v1083_v22 = vld [vmem:[#allocation2 + $0x90] sm:$0xff] }
   0xd   :  { %624 = vmatpush.bf16.msra.mxu3 %v1095_v7  ;;  %v1091_v23 = vld [vmem:[#allocation2 + $0xd0] sm:$0xff]  ;;  %v1066_v24 = vld [vmem:[#allocation2 + $0x8] sm:$0xff]  ;;  %v36_v29 = vld [vmem:[%s1249_s0] sm:$0xff] }
   0xe   :  { %586 = vmatpush.bf16.msra.mxu0 %v1070_v8  ;;  %v1074_v25 = vld [vmem:[#allocation2 + $0x48] sm:$0xff]  ;;  %v1065_v30 = vld [vmem:[#allocation2] sm:$0xff]  ;;  %v176_v33 = vunpack.c.l.b16 %v36_v29  ;;  %v177_v37 = vunpack.c.h.b16 %v36_v29  ;;  %v1104_v38 = vld [vmem:[#allocation2 + $0x138] sm:$0xff] }
   0xf   :  { %599 = vmatpush.bf16.msra.mxu1 %v1078_v9  ;;  %v1082_v26 = vld [vmem:[#allocation2 + $0x88] sm:$0xff]  ;;  %v1073_v31 = vld [vmem:[#allocation2 + $0x40] sm:$0xff]  ;;  %v1112_v39 = vld [vmem:[#allocation2 + $0x178] sm:$0xff] }
  0x10   :  { %612 = vmatpush.bf16.msra.mxu2 %v1086_v10  ;;  %v1090_v27 = vld [vmem:[#allocation2 + $0xc8] sm:$0xff]  ;;  %v1081_v34 = vld [vmem:[#allocation2 + $0x80] sm:$0xff]  ;;  %v1120_v40 = vld [vmem:[#allocation2 + $0x1b8] sm:$0xff]  ;;  %v184_v43 = vpack.c.b16 %v176_v33, %v176_v33  ;;  %v185_v45 = vpack.c.b16 %v177_v37, %v177_v37 }
  0x11   :  { %625 = vmatpush.bf16.msra.mxu3 %v1094_v11  ;;  %v37_v28 = vld [vmem:[%s1249_s0 + $0x8] sm:$0xff]  ;;  %v1089_v35 = vld [vmem:[#allocation2 + $0xc0] sm:$0xff]  ;;  %v1128_v41 = vld [vmem:[#allocation2 + $0x1f8] sm:$0xff] }
  0x12   :  { %587 = vmatpush.bf16.msra.mxu0 %v1069_v12  ;;  %v178_v32 = vunpack.c.l.b16 %v37_v28  ;;  %v179_v36 = vunpack.c.h.b16 %v37_v28  ;;  %v1103_v46 = vld [vmem:[#allocation2 + $0x130] sm:$0xff]  ;;  %v1102_v50 = vld [vmem:[#allocation2 + $0x128] sm:$0xff]  ;;  %v1101_v54 = vld [vmem:[#allocation2 + $0x120] sm:$0xff] }
  0x13   :  { %600 = vmatpush.bf16.msra.mxu1 %v1077_v13  ;;  %v1111_v47 = vld [vmem:[#allocation2 + $0x170] sm:$0xff]  ;;  %v1110_v51 = vld [vmem:[#allocation2 + $0x168] sm:$0xff]  ;;  %v1109_v55 = vld [vmem:[#allocation2 + $0x160] sm:$0xff] }
  0x14   :  { %613 = vmatpush.bf16.msra.mxu2 %v1085_v14  ;;  %v186_v42 = vpack.c.b16 %v178_v32, %v178_v32  ;;  %v187_v44 = vpack.c.b16 %v179_v36, %v179_v36  ;;  %v1119_v48 = vld [vmem:[#allocation2 + $0x1b0] sm:$0xff]  ;;  %v1118_v52 = vld [vmem:[#allocation2 + $0x1a8] sm:$0xff]  ;;  %v1117_v56 = vld [vmem:[#allocation2 + $0x1a0] sm:$0xff] }
  0x15   :  { %626 = vmatpush.bf16.msra.mxu3 %v1093_v15  ;;  %v1127_v49 = vld [vmem:[#allocation2 + $0x1f0] sm:$0xff]  ;;  %v1126_v53 = vld [vmem:[#allocation2 + $0x1e8] sm:$0xff]  ;;  %v1125_v57 = vld [vmem:[#allocation2 + $0x1e0] sm:$0xff] }
  0x16   :  { %588 = vmatpush.bf16.msra.mxu0 %v1068_v16  ;;  %v1100_v58 = vld [vmem:[#allocation2 + $0x118] sm:$0xff]  ;;  %v1099_v62 = vld [vmem:[#allocation2 + $0x110] sm:$0xff]  ;;  %v1098_v2 = vld [vmem:[#allocation2 + $0x108] sm:$0xff] }
  0x17   :  { %601 = vmatpush.bf16.msra.mxu1 %v1076_v17  ;;  %v1108_v59 = vld [vmem:[#allocation2 + $0x158] sm:$0xff]  ;;  %v1107_v63 = vld [vmem:[#allocation2 + $0x150] sm:$0xff]  ;;  %v1106_v3 = vld [vmem:[#allocation2 + $0x148] sm:$0xff] }
  0x18   :  { %614 = vmatpush.bf16.msra.mxu2 %v1084_v18  ;;  %v1116_v60 = vld [vmem:[#allocation2 + $0x198] sm:$0xff]  ;;  %v1115_v0 = vld [vmem:[#allocation2 + $0x190] sm:$0xff]  ;;  %v1114_v5 = vld [vmem:[#allocation2 + $0x188] sm:$0xff] }
  0x19   :  { %627 = vmatpush.bf16.msra.mxu3 %v1092_v19  ;;  %v1124_v61 = vld [vmem:[#allocation2 + $0x1d8] sm:$0xff]  ;;  %v1123_v1 = vld [vmem:[#allocation2 + $0x1d0] sm:$0xff]  ;;  %v1122_v6 = vld [vmem:[#allocation2 + $0x1c8] sm:$0xff] }
  0x1a   :  { %589 = vmatpush.bf16.msra.mxu0 %v1067_v20  ;;  %v38_v4 = vld [vmem:[%s1249_s0 + $0x10] sm:$0xff]  ;;  %v39_v7 = vld [vmem:[%s1249_s0 + $0x18] sm:$0xff]  ;;  %v1097_v10 = vld [vmem:[#allocation2 + $0x100] sm:$0xff] }
  0x1b   :  { %602 = vmatpush.bf16.msra.mxu1 %v1075_v21  ;;  %v180_v8 = vunpack.c.l.b16 %v38_v4  ;;  %v181_v9 = vunpack.c.h.b16 %v38_v4  ;;  %v1105_v11 = vld [vmem:[#allocation2 + $0x140] sm:$0xff]  ;;  %v182_v12 = vunpack.c.l.b16 %v39_v7  ;;  %v183_v13 = vunpack.c.h.b16 %v39_v7  ;;  %v1136_v20 = vld [vmem:[%s1252_s3 + $0x38] sm:$0xff]  ;;  %v1135_v21 = vld [vmem:[%s1252_s3 + $0x30] sm:$0xff] }
  0x1c   :  { %615 = vmatpush.bf16.msra.mxu2 %v1083_v22  ;;  %v1113_v14 = vld [vmem:[#allocation2 + $0x180] sm:$0xff]  ;;  %v1134_v22 = vld [vmem:[%s1252_s3 + $0x28] sm:$0xff] }
  0x1d   :  { %628 = vmatpush.bf16.msra.mxu3 %v1091_v23  ;;  %v1121_v15 = vld [vmem:[#allocation2 + $0x1c0] sm:$0xff]  ;;  %v188_v16 = vpack.c.b16 %v180_v8, %v180_v8  ;;  %v189_v17 = vpack.c.b16 %v181_v9, %v181_v9  ;;  %v190_v18 = vpack.c.b16 %v182_v12, %v182_v12  ;;  %v191_v19 = vpack.c.b16 %v183_v13, %v183_v13  ;;  %v1130_v28 = vld [vmem:[%s1252_s3 + $0x8] sm:$0xff] }
  0x1e   :  { %590 = vmatpush.bf16.msra.mxu0 %v1066_v24  ;;  %v1133_v23 = vld [vmem:[%s1252_s3 + $0x20] sm:$0xff]  ;;  %v1132_v24 = vld [vmem:[%s1252_s3 + $0x18] sm:$0xff] }
  0x1f   :  { %603 = vmatpush.bf16.msra.mxu1 %v1074_v25  ;;  %v1129_v32 = vld [vmem:[%s1252_s3] sm:$0xff] }
  0x20   :  { %616 = vmatpush.bf16.msra.mxu2 %v1082_v26  ;;  %v1131_v26 = vld [vmem:[%s1252_s3 + $0x10] sm:$0xff] }
  0x21   :  { %629 = vmatpush.bf16.msra.mxu3 %v1090_v27 }
  0x22   :  { %591 = vmatpush.bf16.msra.mxu0 %v1065_v30 }
  0x23   :  { %604 = vmatpush.bf16.msra.mxu1 %v1073_v31 }
  0x24   :  { %617 = vmatpush.bf16.msra.mxu2 %v1081_v34  ;;  %v1140_v34 = vld [vmem:[%s1251_s2] ss:$0 sm:$0xff] }
  0x25   :  { %630 = vmatpush.bf16.msra.mxu3 %v1089_v35  ;;  %592 = vmatmul.bf16.vlgmr.msra.gmra.mxu0 %v184_v43 }
  0x26   :  { %636 = vmatpush.bf16.msrb.mxu0 %v1104_v38  ;;  %605 = vmatmul.bf16.vlgmr.msra.gmra.mxu1 %v185_v45 }
  0x27   :  { %649 = vmatpush.bf16.msrb.mxu1 %v1112_v39  ;;  %618 = vmatmul.bf16.vlgmr.msra.gmra.mxu2 %v186_v42 }
  0x28   :  { %662 = vmatpush.bf16.msrb.mxu2 %v1120_v40  ;;  %631 = vmatmul.bf16.vlgmr.msra.gmra.mxu3 %v187_v44 }
  0x29   :  { %675 = vmatpush.bf16.msrb.mxu3 %v1128_v41 }
  0x2a   :  { %637 = vmatpush.bf16.msrb.mxu0 %v1103_v46 }
  0x2b   :  { %650 = vmatpush.bf16.msrb.mxu1 %v1111_v47 }
  0x2c   :  { %663 = vmatpush.bf16.msrb.mxu2 %v1119_v48 }
  0x2d   :  { %676 = vmatpush.bf16.msrb.mxu3 %v1127_v49 }
  0x2e   :  { %638 = vmatpush.bf16.msrb.mxu0 %v1102_v50 }
  0x2f   :  { %651 = vmatpush.bf16.msrb.mxu1 %v1110_v51 }
  0x30   :  { %664 = vmatpush.bf16.msrb.mxu2 %v1118_v52 }
  0x31   :  { %677 = vmatpush.bf16.msrb.mxu3 %v1126_v53 }
  0x32   :  { %639 = vmatpush.bf16.msrb.mxu0 %v1101_v54 }
  0x33   :  { %652 = vmatpush.bf16.msrb.mxu1 %v1109_v55  ;;  %v1141_v55 = vld [vmem:[%s1253_s4] ss:$0 sm:$0xff] }
  0x34   :  { %665 = vmatpush.bf16.msrb.mxu2 %v1117_v56 }
  0x35   :  { %678 = vmatpush.bf16.msrb.mxu3 %v1125_v57 }
  0x36   :  { %640 = vmatpush.bf16.msrb.mxu0 %v1100_v58 }
  0x37   :  { %653 = vmatpush.bf16.msrb.mxu1 %v1108_v59 }
  0x38   :  { %666 = vmatpush.bf16.msrb.mxu2 %v1116_v60 }
  0x39   :  { %679 = vmatpush.bf16.msrb.mxu3 %v1124_v61 }
  0x3a   :  { %641 = vmatpush.bf16.msrb.mxu0 %v1099_v62 }
  0x3b   :  { %654 = vmatpush.bf16.msrb.mxu1 %v1107_v63 }
  0x3c   :  { %667 = vmatpush.bf16.msrb.mxu2 %v1115_v0 }
  0x3d   :  { %680 = vmatpush.bf16.msrb.mxu3 %v1123_v1 }
  0x3e   :  { %642 = vmatpush.bf16.msrb.mxu0 %v1098_v2 }
  0x3f   :  { %655 = vmatpush.bf16.msrb.mxu1 %v1106_v3 }
  0x40   :  { %668 = vmatpush.bf16.msrb.mxu2 %v1114_v5 }
  0x41   :  { %681 = vmatpush.bf16.msrb.mxu3 %v1122_v6 }
  0x42   :  { %643 = vmatpush.bf16.msrb.mxu0 %v1097_v10 }
  0x43   :  { %656 = vmatpush.bf16.msrb.mxu1 %v1105_v11 }
  0x44   :  { %669 = vmatpush.bf16.msrb.mxu2 %v1113_v14 }
  0x45   :  { %682 = vmatpush.bf16.msrb.mxu3 %v1121_v15  ;;  %644 = vmatmul.bf16.vlgmr.msrb.gmra.mxu0 %v188_v16 }
  0x46   :  { %657 = vmatmul.bf16.vlgmr.msrb.gmra.mxu1 %v189_v17  ;;  %758 = vmatpush.bf16.msra.mxu0 %v1136_v20 }
  0x47   :  { %670 = vmatmul.bf16.vlgmr.msrb.gmra.mxu2 %v190_v18 }
  0x48   :  { %683 = vmatmul.bf16.vlgmr.msrb.gmra.mxu3 %v191_v19 }
  0x4a   :  { %759 = vmatpush.bf16.msra.mxu0 %v1135_v21 }
  0x4e   :  { %760 = vmatpush.bf16.msra.mxu0 %v1134_v22 }
  0x52   :  { %761 = vmatpush.bf16.msra.mxu0 %v1133_v23 }
  0x56   :  { %762 = vmatpush.bf16.msra.mxu0 %v1132_v24 }
  0x5a   :  { %763 = vmatpush.bf16.msra.mxu0 %v1131_v26 }
  0x5e   :  { %764 = vmatpush.bf16.msra.mxu0 %v1130_v28 }
  0x62   :  { %765 = vmatpush.bf16.msra.mxu0 %v1129_v32 }
  0xa2   :  { %v593_v25 = vpop.f32.mrf.mxu0 }
  0xa3   :  { %v606_v27 = vpop.f32.mrf.mxu1  ;;  %v594_v37 = vadd.f32 %v1140_v34, %v593_v25 }
  0xa5   :  { %v607_v38 = vadd.f32 %v606_v27, %v594_v37 }
  0xaa   :  { %v619_v29 = vpop.f32.mrf.mxu2  ;;  %v595_v31 = vpop.f32.mrf.mxu0 }
  0xab   :  { %v632_v30 = vpop.f32.mrf.mxu3  ;;  %v608_v33 = vpop.f32.mrf.mxu1  ;;  %v620_v39 = vadd.f32 %v619_v29, %v607_v38 }
  0xad   :  { %v633_v40 = vadd.f32 %v632_v30, %v620_v39 }
  0xb2   :  { %v621_v35 = vpop.f32.mrf.mxu2 }
  0xb3   :  { %v634_v36 = vpop.f32.mrf.mxu3 }
  0xc2   :  { %v645_v41 = vpop.f32.mrf.mxu0 }
  0xc3   :  { %v658_v42 = vpop.f32.mrf.mxu1  ;;  %v646_v43 = vadd.f32 %v645_v41, %v633_v40 }
  0xc5   :  { %v659_v44 = vadd.f32 %v658_v42, %v646_v43 }
  0xca   :  { %v671_v45 = vpop.f32.mrf.mxu2  ;;  %v647_v48 = vpop.f32.mrf.mxu0 }
  0xcb   :  { %v684_v46 = vpop.f32.mrf.mxu3  ;;  %v672_v47 = vadd.f32 %v671_v45, %v659_v44  ;;  %v660_v49 = vpop.f32.mrf.mxu1 }
  0xcd   :  { %v685_v50 = vadd.f32 %v684_v46, %v672_v47 }
  0xcf   :  { %v688_v51 = vmax.f32 %v685_v50, 0.0 }
  0xd1   :  { %v689_v52 = vpack.c.bf16 %v688_v51, %v688_v51 }
  0xd2   :  { %v673_v53 = vpop.f32.mrf.mxu2 }
  0xd3   :  { %v686_v54 = vpop.f32.mrf.mxu3  ;;  %766 = vmatmul.bf16.vlgmr.msra.gmra.mxu0 %v689_v52 }
 0x150   :  { %v767_v56 = vpop.f32.mrf.mxu0 }
 0x151   :  { %v768_v57 = vadd.f32 %v1141_v55, %v767_v56 }
 0x153   :  { %771 = vst [vmem:[%s1254_s5] sm:$0xff] %v768_v57 }
 0x158   :  { %v769_v58 = vpop.f32.mrf.mxu0 }
 0x159   :  { %776 = vsyncpa [#allocation3], 1 }

</bundles_post_ra>
